<compile_context>
chip_gen: v6e
topology: v6e:2x2x1
jax: 0.10.0
libtpu: 0.0.40
codegen_flags: <defaults>
</compile_context>

<pallas_src>
import functools
import math

import jax
import jax.numpy as jnp
from jax.experimental import pallas as pl
from jax.experimental.pallas import tpu as pltpu

F32 = jnp.float32
BF16 = jnp.bfloat16
_MIB = 1024 * 1024


# -----------------------------------------------------------------------------
# hardware-aware sizing helpers
# -----------------------------------------------------------------------------
def _device_kind():
    try:
        return jax.devices()[0].device_kind.lower()
    except Exception:
        return ""


def _vmem_limit_bytes():
    """Explicit scoped-VMEM budget (defaults are only 16/32 MiB)."""
    try:
        cap = int(pltpu.get_tpu_info().vmem_capacity_bytes)
    except Exception:
        kind = _device_kind()
        cap = 64 * _MIB if ("v7" in kind or "7x" in kind) else 128 * _MIB
    return int(min(cap - 8 * _MIB, 100 * _MIB))


def _num_tensorcores():
    """1 TensorCore per chip on v5e/v6e, 2 on v4/v5p/v7x (megacore)."""
    kind = _device_kind()
    if any(t in kind for t in ("v5 lite", "v5lite", "v5e", "v6 lite", "v6lite", "v6e")):
        return 1
    if any(t in kind for t in ("v4", "v5p", "v7", "7x")):
        return 2
    return 1


def _pick_batch_tile(batch, n_cores, row_bytes, act_budget):
    """Largest batch tile that fits the activation budget; on dual-TC chips keep
    >= n_cores grid steps so the 'parallel' batch axis can shard across cores."""
    if batch <= 1:
        return max(batch, 1)
    divisors = [d for d in range(1, batch + 1) if batch % d == 0]
    fitting = [d for d in divisors if d * row_bytes <= act_budget] or [1]
    bt = max(fitting)
    if n_cores > 1:
        cap = max(1, batch // n_cores)
        bt = max([d for d in fitting if d <= cap] or [1])
    return bt


def _pick_col_tile(sd, mh, budget):
    """Lane-aligned column tile for the mapping MLP's second matmul."""
    if sd % 128 != 0:
        return sd                         # full width (block dim == array dim)
    if sd <= 4096 and 2 * (mh * sd * 2) <= budget:
        return sd
    best, tn = 128, 128
    while tn <= min(sd, 4096):
        if sd % tn == 0 and 2 * (mh * tn * 2) <= budget:
            best = tn
        tn += 128
    return best


# -----------------------------------------------------------------------------
# BlockSpec helpers
# -----------------------------------------------------------------------------
def _const_spec(arr):
    """Full-array VMEM block with a constant block index (weights)."""
    zeros = (0,) * arr.ndim
    return pl.BlockSpec(arr.shape, lambda *_: zeros)


def _layer_spec(arr):
    """Stream one layer's slab per grid step along the layer ('arbitrary') axis."""
    rest = arr.shape[1:]
    zeros = (0,) * len(rest)
    return pl.BlockSpec((1,) + rest, lambda b, l: (l,) + zeros)


# -----------------------------------------------------------------------------
# kernel 1: mapping MLP (Linear -> GELU -> Linear), column-tiled second matmul
# -----------------------------------------------------------------------------
def _mapping_kernel(x_ref, w1_ref, b1_ref, w2_ref, b2_ref, o_ref):
    x = x_ref[...].astype(BF16)                                   # (B, Z)
    h = jnp.dot(x, w1_ref[...], preferred_element_type=F32) + b1_ref[...]
    # TODO(synk): reference MLP internals not given; Linear->GELU(tanh)->Linear assumed.
    h = jax.nn.gelu(h, approximate=True)
    o_ref[...] = jnp.dot(h.astype(BF16), w2_ref[...],
                         preferred_element_type=F32) + b2_ref[...]


def mapping_mlp(x, w1, b1, w2, b2, vmem_limit):
    B, Z = x.shape
    MH, SD = w2.shape
    tn = _pick_col_tile(SD, MH, vmem_limit // 2)
    return pl.pallas_call(
        _mapping_kernel,
        out_shape=jax.ShapeDtypeStruct((B, SD), F32),
        grid_spec=pltpu.PrefetchScalarGridSpec(
            num_scalar_prefetch=0,
            grid=(SD // tn,),
            in_specs=[_const_spec(x),      # tiny first layer recomputed per tile
                      _const_spec(w1),
                      _const_spec(b1),
                      pl.BlockSpec((MH, tn), lambda j: (0, j)),
                      pl.BlockSpec((1, tn), lambda j: (0, j))],
            out_specs=pl.BlockSpec((B, tn), lambda j: (0, j))),
        compiler_params=pltpu.CompilerParams(
            dimension_semantics=("parallel",),
            vmem_limit_bytes=vmem_limit),
    )(x, w1, b1, w2, b2)


# -----------------------------------------------------------------------------
# kernel 2: transformer stack (one layer per grid step) + final SLN + SIREN
# -----------------------------------------------------------------------------
def _transformer_kernel(
    w_ref,                                    # (bt, S, D)   f32  modulation tokens
    emb_ref,                                  # (S, D)       f32
    ln_fin_ref,                               # (2, D)       f32  final-SLN LN affine
    s1w_ref, s1b_ref, s2w_ref, s2b_ref,       # SIREN output net (w: bf16, b: f32)
    gb_ref,                                   # (2L+1, 2)    f32  SLN gamma/beta (SMEM)
    ln_ref,                                   # (1, 2, 2, D) f32  this layer's LN affine
    wqkv_ref,                                 # (1, 3, D, D) bf16
    bqkv_ref,                                 # (1, 3, 1, D) f32
    wo_ref,                                   # (1, H, dh, D) bf16
    bo_ref,                                   # (1, 1, D)    f32
    m1w_ref, m1b_ref, m2w_ref, m2b_ref,       # MLP (w: bf16, b: f32)
    o_ref,                                    # (bt, S, CS_pad) f32
    h_ref,                                    # scratch (bt, S, D) f32 residual stream
    *, n_layers, n_heads, omega_first, omega_rest):
    l = pl.program_id(1)
    bt, S, D = w_ref.shape
    dh = D // n_heads
    scale = 1.0 / math.sqrt(dh)

    @pl.when(l == 0)
    def _init():
        h_ref[...] = jnp.broadcast_to(emb_ref[...][None, :, :], (bt, S, D))

    wmod = w_ref[...]                                            # (bt, S, D) f32

    def sln(hin, ln_wb, g_idx):
        # self-modulated LayerNorm, factored as  w * (gamma * LN(h) + beta)
        mean = jnp.mean(hin, axis=-1, keepdims=True)
        var = jnp.mean(jnp.square(hin - mean), axis=-1, keepdims=True)
        hn = (hin - mean) * jax.lax.rsqrt(var + 1e-5)
        hn = hn * ln_wb[0:1, :] + ln_wb[1:2, :]                  # LN affine
        gamma = gb_ref[g_idx, 0]
        beta = gb_ref[g_idx, 1]
        return wmod * (gamma * hn + beta)

    # -------------------- multi-head self-attention branch --------------------
    h = h_ref[...]
    xa = sln(h, ln_ref[0, 0], 2 * l).reshape(bt * S, D).astype(BF16)
    q = (jnp.dot(xa, wqkv_ref[0, 0], preferred_element_type=F32)
         + bqkv_ref[0, 0]).reshape(bt, S, D)
    k = (jnp.dot(xa, wqkv_ref[0, 1], preferred_element_type=F32)
         + bqkv_ref[0, 1]).reshape(bt, S, D)
    v = (jnp.dot(xa, wqkv_ref[0, 2], preferred_element_type=F32)
         + bqkv_ref[0, 2]).reshape(bt, S, D)

    attn = jnp.zeros((bt * S, D), F32)
    # TODO(synk): QK^T / PV stay a short static per-head loop; a head-batched
    # 4-D dot_general would need an in-kernel (S, heads) transpose whose Mosaic
    # lowering is not guaranteed at these layouts.  The concat is gone: each
    # head accumulates through its own (dh, D) slab of the output projection.
    for hd in range(n_heads):
        lo = hd * dh
        qh = q[:, :, lo:lo + dh].astype(BF16)
        kh = k[:, :, lo:lo + dh].astype(BF16)
        vh = v[:, :, lo:lo + dh].astype(BF16)
        s = jnp.einsum("bsd,btd->bst", qh, kh,
                       preferred_element_type=F32) * scale
        s = s - jnp.max(s, axis=-1, keepdims=True)
        e = jnp.exp(s)
        p = e * pl.reciprocal(jnp.sum(e, axis=-1, keepdims=True), approx=True)
        ctx = jnp.einsum("bst,btd->bsd", p.astype(BF16), vh,
                         preferred_element_type=F32)
        attn = attn + jnp.dot(ctx.reshape(bt * S, dh).astype(BF16),
                              wo_ref[0, hd], preferred_element_type=F32)
    h = h + (attn + bo_ref[0]).reshape(bt, S, D)

    # ------------------------------ MLP branch --------------------------------
    xm = sln(h, ln_ref[0, 1], 2 * l + 1).reshape(bt * S, D).astype(BF16)
    m = jnp.dot(xm, m1w_ref[0], preferred_element_type=F32) + m1b_ref[0]
    m = jax.nn.gelu(m, approximate=True)
    m = jnp.dot(m.astype(BF16), m2w_ref[0], preferred_element_type=F32) + m2b_ref[0]
    h = h + m.reshape(bt, S, D)
    h_ref[...] = h

    # -------------------- final SLN + SIREN output net -------------------------
    @pl.when(l == n_layers - 1)
    def _finalize():
        y = sln(h, ln_fin_ref[...], 2 * n_layers).reshape(bt * S, D).astype(BF16)
        y = jnp.dot(y, s1w_ref[...], preferred_element_type=F32) + s1b_ref[...]
        y = jnp.sin(omega_first * y)
        y = jnp.dot(y.astype(BF16), s2w_ref[...],
                    preferred_element_type=F32) + s2b_ref[...]
        # TODO(synk): non-first SIREN omega assumed 1.0, sin kept on final layer.
        y = jnp.sin(omega_rest * y)
        o_ref[...] = y.reshape(bt, S, -1)


# -----------------------------------------------------------------------------
# parameters & forward
# -----------------------------------------------------------------------------
def init_generator_params(key, cfg):
    Z, S, C = cfg["lattent_size"], cfg["img_size"], cfg["n_channels"]
    D, OH, L = (cfg["feature_hidden_size"], cfg["output_hidden_dim"],
                cfg["n_transformer_layers"])
    Hm = 4 * D   # TODO(synk): TransformerSLN MLP hidden size not given; assume 4x
    MH = Z       # TODO(synk): mapping MLP hidden size not given; assume = in_features
    n_sln = 2 * L + 1
    keys = iter(jax.random.split(key, 32))

    def nrm(shape, scale=0.02):
        return (scale * jax.random.normal(next(keys), shape)).astype(F32)

    def zeros(shape):
        return jnp.zeros(shape, F32)

    params = dict(
        map_w1=nrm((Z, MH)), map_b1=zeros((1, MH)),
        map_w2=nrm((MH, S * D)), map_b2=zeros((1, S * D)),
        emb=jax.random.normal(next(keys), (S, D)).astype(F32),
        # LayerNorm affine (weight=1, bias=0), stacked per SLN instance.
        ln_wb=jnp.stack([jnp.ones((n_sln, D), F32), jnp.zeros((n_sln, D), F32)],
                        axis=1),                          # (n_sln, 2, D)
        # scalar gamma/beta per SLN instance (read from SMEM in the kernel).
        sln_gb=jax.random.normal(next(keys), (n_sln, 2)).astype(F32),
        # transformer layer weights, stacked along the layer axis.
        wqkv=nrm((L, 3, D, D)), bqkv=zeros((L, 3, 1, D)),
        wo=nrm((L, D, D)), bo=zeros((L, 1, D)),
        mlp_w1=nrm((L, D, Hm)), mlp_b1=zeros((L, 1, Hm)),
        mlp_w2=nrm((L, Hm, D)), mlp_b2=zeros((L, 1, D)),
    )
    # SIREN output net (SIREN-paper style init, deterministic).
    w0 = 30.0
    lim1 = 1.0 / D
    params["siren1_w"] = jax.random.uniform(next(keys), (D, OH), F32, -lim1, lim1)
    params["siren1_b"] = jax.random.uniform(next(keys), (1, OH), F32, -lim1, lim1)
    lim2 = math.sqrt(6.0 / OH) / w0
    params["siren2_w"] = jax.random.uniform(next(keys), (OH, C * S), F32, -lim2, lim2)
    params["siren2_b"] = jax.random.uniform(next(keys), (1, C * S), F32, -lim2, lim2)
    return params


def generator_forward(params, cfg, x):
    B = x.shape[0]
    S, D, C = cfg["img_size"], cfg["feature_hidden_size"], cfg["n_channels"]
    L, H = cfg["n_transformer_layers"], cfg["n_heads"]
    assert D % H == 0, "feature_hidden_size must be divisible by n_heads"
    dh = D // H
    CS = C * S
    CS_pad = ((CS + 127) // 128) * 128            # lane-dense output slab
    Hm = params["mlp_w1"].shape[-1]
    vmem_limit = _vmem_limit_bytes()

    # ------------------ mapping MLP (kernel 1, column-tiled) ------------------
    w = mapping_mlp(x.astype(F32),
                    params["map_w1"].astype(BF16), params["map_b1"],
                    params["map_w2"].astype(BF16), params["map_b2"],
                    vmem_limit)
    w = w.reshape(B, S, D)   # lane-splitting reshape stays in the wrapper

    # ----------- transformer stack + final SLN + SIREN (kernel 2) -------------
    # Wrapper-side re-layouts: per-head output projection, per-layer LN slabs,
    # padded SIREN head, bf16 weight casts (halves DMA, feeds bf16-native MXU).
    ln_layers = params["ln_wb"][:2 * L].reshape(L, 2, 2, D)
    ln_final = params["ln_wb"][2 * L]
    wo_heads = params["wo"].reshape(L, H, dh, D).astype(BF16)
    s2w = jnp.pad(params["siren2_w"], ((0, 0), (0, CS_pad - CS))).astype(BF16)
    s2b = jnp.pad(params["siren2_b"], ((0, 0), (0, CS_pad - CS)))

    consts = (params["emb"], ln_final,
              params["siren1_w"].astype(BF16), params["siren1_b"], s2w, s2b)
    layered = (ln_layers,
               params["wqkv"].astype(BF16), params["bqkv"],
               wo_heads, params["bo"],
               params["mlp_w1"].astype(BF16), params["mlp_b1"],
               params["mlp_w2"].astype(BF16), params["mlp_b2"])

    def _nbytes(a):
        return int(a.size) * a.dtype.itemsize

    # VMEM resident weights: consts + one layer's streamed blocks (x2 for the
    # default double buffering); the rest of the budget goes to activations.
    resident = 2 * (sum(_nbytes(a) for a in consts)
                    + sum(_nbytes(a) // L for a in layered))
    act_budget = max(vmem_limit - resident, vmem_limit // 4)
    row_bytes = 4 * S * (16 * D + 2 * Hm + 2 * S + 3 * CS_pad)
    bt = _pick_batch_tile(B, _num_tensorcores(), row_bytes, act_budget)

    kern = functools.partial(_transformer_kernel, n_layers=L, n_heads=H,
                             omega_first=30.0, omega_rest=1.0)
    in_specs = ([pl.BlockSpec((bt, S, D), lambda b, l: (b, 0, 0))]
                + [_const_spec(a) for a in consts]
                + [pl.BlockSpec(memory_space=pltpu.MemorySpace.SMEM)]
                + [_layer_spec(a) for a in layered])

    out = pl.pallas_call(
        kern,
        out_shape=jax.ShapeDtypeStruct((B, S, CS_pad), F32),
        grid_spec=pltpu.PrefetchScalarGridSpec(
            num_scalar_prefetch=0,
            grid=(B // bt, L),
            in_specs=in_specs,
            out_specs=pl.BlockSpec((bt, S, CS_pad), lambda b, l: (b, 0, 0)),
            scratch_shapes=[pltpu.VMEM((bt, S, D), F32)]),
        compiler_params=pltpu.CompilerParams(
            dimension_semantics=("parallel", "arbitrary"),
            vmem_limit_bytes=vmem_limit),
    )(w, *consts, params["sln_gb"], *layered)

    out = out[:, :, :CS]
    # same raw reinterpretation as PyTorch's `.view(B, C, S, S)` on (B, S, C*S)
    return out.reshape(B, C, S, S)


if __name__ == "__main__":
    cfg = dict(lattent_size=16, img_size=8, n_channels=2,
               feature_hidden_size=32, n_transformer_layers=2,
               output_hidden_dim=64, n_heads=4)
    key = jax.random.PRNGKey(0)
    pkey, xkey = jax.random.split(key)
    params = init_generator_params(pkey, cfg)
    x = jax.random.normal(xkey, (2, cfg["lattent_size"]), dtype=F32)

    out = generator_forward(params, cfg, x)
    out = jax.block_until_ready(out)

    assert out.shape == (2, cfg["n_channels"], cfg["img_size"], cfg["img_size"]), out.shape
    assert bool(jnp.all(jnp.isfinite(out)))
    print("KERNEL_OK")
</pallas_src>

<mosaic_0001>
module attributes {stable_mosaic.version = 11 : i64} {
  func.func @_mapping_kernel(%arg0: i32, %arg1: memref<2x16xf32, #tpu.memory_space<vmem>>, %arg2: memref<16x16xbf16, #tpu.memory_space<vmem>>, %arg3: memref<1x16xf32, #tpu.memory_space<vmem>>, %arg4: memref<16x256xbf16, #tpu.memory_space<vmem>>, %arg5: memref<1x256xf32, #tpu.memory_space<vmem>>, %arg6: memref<2x256xf32, #tpu.memory_space<vmem>>) attributes {dimension_semantics = [#tpu.dimension_semantics<parallel>], iteration_bounds = array<i64: 1>, scalar_prefetch = 0 : i64, scratch_operands = 0 : i64, tpu.core_type = #tpu.core_type<tc>, window_params = [{pipeline_mode = #tpu.pipeline_mode<synchronous>, transform_indices = @transform_0, window_bounds = array<i64: 2, 16>}, {pipeline_mode = #tpu.pipeline_mode<synchronous>, transform_indices = @transform_1, window_bounds = array<i64: 16, 16>}, {pipeline_mode = #tpu.pipeline_mode<synchronous>, transform_indices = @transform_2, window_bounds = array<i64: 1, 16>}, {transform_indices = @transform_3, window_bounds = array<i64: 16, 256>}, {transform_indices = @transform_4, window_bounds = array<i64: 1, 256>}, {transform_indices = @transform_5, window_bounds = array<i64: 2, 256>}]} {
    %c0 = arith.constant 0 : index
    %c0_0 = arith.constant 0 : index
    %0 = vector.load %arg1[%c0, %c0_0] : memref<2x16xf32, #tpu.memory_space<vmem>>, vector<2x16xf32>
    %1 = arith.truncf %0 : vector<2x16xf32> to vector<2x16xbf16>
    %c0_1 = arith.constant 0 : index
    %c0_2 = arith.constant 0 : index
    %2 = vector.load %arg2[%c0_1, %c0_2] : memref<16x16xbf16, #tpu.memory_space<vmem>>, vector<16x16xbf16>
    %cst = arith.constant dense<0.000000e+00> : vector<2x16xf32>
    %3 = tpu.matmul %1, %2, %cst {dimension_numbers = #tpu.dot_dimension_numbers<[1], [0], [0], [1], [0, 0, 1, 1], [], []>} : vector<2x16xbf16>, vector<16x16xbf16>, vector<2x16xf32> -> vector<2x16xf32>
    %c0_3 = arith.constant 0 : index
    %c0_4 = arith.constant 0 : index
    %4 = vector.load %arg3[%c0_3, %c0_4] : memref<1x16xf32, #tpu.memory_space<vmem>>, vector<1x16xf32>
    %5 = vector.broadcast %4 : vector<1x16xf32> to vector<2x16xf32>
    %6 = arith.addf %3, %5 : vector<2x16xf32>
    %7 = arith.mulf %6, %6 : vector<2x16xf32>
    %8 = arith.mulf %6, %7 : vector<2x16xf32>
    %cst_5 = arith.constant 4.471500e-02 : f32
    %9 = vector.broadcast %cst_5 : f32 to vector<2x16xf32>
    %10 = arith.mulf %9, %8 : vector<2x16xf32>
    %11 = arith.addf %6, %10 : vector<2x16xf32>
    %cst_6 = arith.constant 0.797884583 : f32
    %12 = vector.broadcast %cst_6 : f32 to vector<2x16xf32>
    %13 = arith.mulf %12, %11 : vector<2x16xf32>
    %14 = math.tanh %13 : vector<2x16xf32>
    %cst_7 = arith.constant 1.000000e+00 : f32
    %15 = vector.broadcast %cst_7 : f32 to vector<2x16xf32>
    %16 = arith.addf %15, %14 : vector<2x16xf32>
    %cst_8 = arith.constant 5.000000e-01 : f32
    %17 = vector.broadcast %cst_8 : f32 to vector<2x16xf32>
    %18 = arith.mulf %17, %16 : vector<2x16xf32>
    %19 = arith.mulf %6, %18 : vector<2x16xf32>
    %20 = arith.truncf %19 : vector<2x16xf32> to vector<2x16xbf16>
    %c0_9 = arith.constant 0 : index
    %c0_10 = arith.constant 0 : index
    %21 = vector.load %arg4[%c0_9, %c0_10] : memref<16x256xbf16, #tpu.memory_space<vmem>>, vector<16x256xbf16>
    %cst_11 = arith.constant dense<0.000000e+00> : vector<2x256xf32>
    %22 = tpu.matmul %20, %21, %cst_11 {dimension_numbers = #tpu.dot_dimension_numbers<[1], [0], [0], [1], [0, 0, 1, 1], [], []>} : vector<2x16xbf16>, vector<16x256xbf16>, vector<2x256xf32> -> vector<2x256xf32>
    %c0_12 = arith.constant 0 : index
    %c0_13 = arith.constant 0 : index
    %23 = vector.load %arg5[%c0_12, %c0_13] : memref<1x256xf32, #tpu.memory_space<vmem>>, vector<1x256xf32>
    %24 = vector.broadcast %23 : vector<1x256xf32> to vector<2x256xf32>
    %25 = arith.addf %22, %24 : vector<2x256xf32>
    %c0_14 = arith.constant 0 : index
    %c0_15 = arith.constant 0 : index
    %26 = vector.load %arg6[%c0_14, %c0_15] : memref<2x256xf32, #tpu.memory_space<vmem>>, vector<2x256xf32>
    tpu.vector_store %arg6[%c0_14, %c0_15], %25 {strides = array<i32>} : memref<2x256xf32, #tpu.memory_space<vmem>>, vector<2x256xf32>,
    return
  }
  func.func @transform_0(%arg0: i32) -> (i32, i32) {
    %c0_i32 = arith.constant 0 : i32
    %c0_i32_0 = arith.constant 0 : i32
    %c0_i32_1 = arith.constant 0 : i32
    return %c0_i32, %c0_i32_0 : i32, i32
  }
  func.func @transform_1(%arg0: i32) -> (i32, i32) {
    %c0_i32 = arith.constant 0 : i32
    %c0_i32_0 = arith.constant 0 : i32
    %c0_i32_1 = arith.constant 0 : i32
    return %c0_i32, %c0_i32_0 : i32, i32
  }
  func.func @transform_2(%arg0: i32) -> (i32, i32) {
    %c0_i32 = arith.constant 0 : i32
    %c0_i32_0 = arith.constant 0 : i32
    %c0_i32_1 = arith.constant 0 : i32
    return %c0_i32, %c0_i32_0 : i32, i32
  }
  func.func @transform_3(%arg0: i32) -> (i32, i32) {
    %c0_i32 = arith.constant 0 : i32
    %c0_i32_0 = arith.constant 0 : i32
    return %c0_i32, %arg0 : i32, i32
  }
  func.func @transform_4(%arg0: i32) -> (i32, i32) {
    %c0_i32 = arith.constant 0 : i32
    %c0_i32_0 = arith.constant 0 : i32
    return %c0_i32, %arg0 : i32, i32
  }
  func.func @transform_5(%arg0: i32) -> (i32, i32) {
    %c0_i32 = arith.constant 0 : i32
    %c0_i32_0 = arith.constant 0 : i32
    return %c0_i32, %arg0 : i32, i32
  }
}

</mosaic_0001>

<bundles_post_ra>
// kernel: tpu_custom_call.1
= control target key start
LH: loop header
LB: loop body
LE: loop exit
PB: predicated region body
PF: predicated region fallthrough
CT: control target
= control target key end

     0   :  { %10 = vsyncpa [#allocation3], 0  ;;  %s407_s0 = inlined_call_operand.hbm [shape: f32[2,16], index: 0, kind: input, shape index: {}]   ;;  %s408_s1 = inlined_call_operand.hbm [shape: bf16[16,16], index: 1, kind: input, shape index: {}]   ;;  %s409_s2 = inlined_call_operand.vmem [shape: f32[1,16], index: 2, kind: input, shape index: {}]   ;;  %s410_s3 = inlined_call_operand.hbm [shape: bf16[16,256], index: 3, kind: input, shape index: {}]   ;;  %s411_s4 = inlined_call_operand.vmem [shape: f32[1,256], index: 4, kind: input, shape index: {}]   ;;  %s412_s5 = inlined_call_operand.hbm [shape: f32[2,256], index: 5, kind: output, shape index: {}]  }
   0x1   :  { %11 = vsyncpa [#allocation6], 0 }
   0x2   :  { %12 = vsyncpa [#allocation4], 0  ;;  %s346_s18 = smov [#allocation5]  }
   0x3   :  { %s28_s19 = sshll.u32 %s346_s18, 4  ;;  %s29_s19 = int_to_ptr.vmem [resolvable:$true] %s28_s19 }
   0x4   :  { %s268_s20 = scalar_lea.vmem %s29_s19, 128  ;;  %p273_p1 = scmp.lt.s32.totalorder %s29_s19, %s29_s19 }
   0x5   :  { %p269_p0 = scmp.ne.s32.totalorder %s29_s19, %s268_s20  ;;  %p274_p2 = scmp.lt.s32.totalorder %s268_s20, %s268_s20 }
   0x7   :  { %p275_p3 = por %p274_p2, %p273_p1 }
   0x9   :  { %p276_p4 = pnand %p275_p3, %p269_p0 }
   0xb   :  { %279 = shalt.err (!%p276_p4)
}
   0xc   :  { %s347_s21 = smov 64   ;;  %s348_s22 = smov 4  }
   0xd   :  { %34 = dma.hbm_to_vmem [thread:$0]  %s408_s1, 128, %s29_s19, [#allocation6], %s347_s21, %s347_s21, %s348_s22  }
   0xe   :  { %s349_s25 = smov [#allocation2]   ;;  %s350_s27 = smov [#allocation7]  }
   0xf   :  { %s19_s26 = sshll.u32 %s349_s25, 4  ;;  %s42_s28 = sshll.u32 %s350_s27, 4  ;;  %s20_s26 = int_to_ptr.vmem [resolvable:$true] %s19_s26  ;;  %s43_s28 = int_to_ptr.vmem [resolvable:$true] %s42_s28 }
  0x10   :  { %s288_s29 = scalar_lea.vmem %s20_s26, 32  ;;  %p293_p6 = scmp.lt.s32.totalorder %s20_s26, %s20_s26 }
  0x11   :  { %p289_p5 = scmp.ne.s32.totalorder %s20_s26, %s288_s29  ;;  %p294_p7 = scmp.lt.s32.totalorder %s288_s29, %s288_s29 }
  0x13   :  { %p295_p8 = por %p294_p7, %p293_p6 }
  0x15   :  { %p296_p9 = pnand %p295_p8, %p289_p5 }
  0x17   :  { %299 = shalt.err (!%p296_p9)
}
  0x18   :  { %22 = dma.hbm_to_vmem [thread:$0]  %s407_s0, 32, %s20_s26, [#allocation3]  }
  0x19   :  { %s308_s7 = scalar_lea.vmem %s43_s28, 256  ;;  %p313_p11 = scmp.lt.s32.totalorder %s43_s28, %s43_s28 }
  0x1a   :  { %p309_p10 = scmp.ne.s32.totalorder %s43_s28, %s308_s7  ;;  %p314_p12 = scmp.lt.s32.totalorder %s308_s7, %s308_s7 }
  0x1c   :  { %p315_p13 = por %p314_p12, %p313_p11 }
  0x1e   :  { %p316_p0 = pnand %p315_p13, %p309_p10 }
  0x20   :  { %319 = shalt.err (!%p316_p0)
}
  0x21   :  { %s351_s1 = smov 128   ;;  %s352_s8 = smov 8  }
  0x22   :  { %48 = dma.hbm_to_vmem [thread:$0]  %s410_s3, 256, %s43_s28, [#allocation6], %s351_s1, %s351_s1, %s352_s8  }
  0x23   :  { %340 = dma.done.wait [#allocation3], 32  }
  0x24   :  { %341 = vsyncadd [#allocation3], 4294967264 }
  0x25   :  { %342 = dma.done.wait [#allocation6], 384  }
  0x26   :  { %343 = vsyncadd [#allocation6], 4294966912  ;;  %v353_v0 = vmov 0.0   ;;  %vm354_vm0 = vmmov 0   ;;  %v254_v1 = vld [vmem:[#allocation5] sm:$0xff]   ;;  %vm78_vm1 = vcmask 130048   ;;  %v136_v23 = vlaneseq }
  0x27   :  { %237 = vmatprep.subr.bf16.mxu0 %v353_v0  ;;  %239 = vmatprep.mubr.msk.bf16.mxu0 %vm354_vm0, %v353_v0  ;;  %v61_v2 = vld [vmem:[#allocation2] sm:$0x3]  ;;  %v255_v4 = vld [vmem:[#allocation7 + $0x4] ss:$8 sps:$4 sm:$0xff]   ;;  %v257_v5 = vld [vmem:[#allocation7] ss:$8 sps:$4 sm:$0xff]  }
  0x28   :  { %238 = vmatpush3.bf16.msra.mxu0 %v254_v1  ;;  %v62_v3 = vpack.c.bf16 %v61_v2, %v61_v2  ;;  %v355_v6 = vmov 0   ;;  %173 = vmatprep.subr.bf16.mxu1 %v255_v4  ;;  %v228_v7 = vld [vmem:[%s409_s2] ss:$0 sm:$0xff]  ;;  %v137_v24 = vshrl.u32 %v136_v23, 7  ;;  %s356_s12 = smov [#allocation8]  }
  0x29   :  { %191 = vmatprep.mubr.bf16.mxu1 %v355_v6  ;;  %174 = vmatpush1.bf16.msra.mxu1 %v257_v5  ;;  %v134_v27 = vld [vmem:[%s411_s4] sm:$0x3]  ;;  %s218_s13 = sshll.u32 %s356_s12, 4  ;;  %s219_s13 = int_to_ptr.vmem [resolvable:$true] %s218_s13 }
  0x2a   :  { %v138_v25 = vsub.s32 0, %v137_v24  ;;  %v142_v26 = vsub.s32 1, %v137_v24  ;;  %s320_s14 = scalar_lea.vmem %s219_s13, 64  ;;  %p325_p2 = scmp.lt.s32.totalorder %s219_s13, %s219_s13 }
  0x2b   :  { %240 = vmatmul.mubr.msk.bf16.vlgmr.msra.gmra.mxu0 %vm78_vm1, %v62_v3  ;;  %p321_p1 = scmp.ne.s32.totalorder %s219_s13, %s320_s14  ;;  %p326_p3 = scmp.lt.s32.totalorder %s320_s14, %s320_s14 }
  0x2c   :  { %v139_v28 = vrot.slane %v134_v27, %v138_v25  ;;  %v143_v29 = vrot.slane %v134_v27, %v142_v26 }
  0x2d   :  { %p327_p4 = por %p326_p3, %p325_p2 }
  0x2f   :  { %p328_p5 = pnand %p327_p4, %p321_p1 }
  0xeb   :  { %v116_v8 = vpop.f32.mrf.mxu0 }
  0xec   :  { %v117_v9 = vadd.f32 %v228_v7, %v116_v8 }
  0xed   :  { %v241_v10 = vpop.f32.mrf.mxu0 }
  0xee   :  { %v122_v11 = vmul.f32 %v117_v9, %v117_v9 }
  0xef   :  { %v119_v12 = vpop.f32.mrf.mxu0 }
  0xf0   :  { %v123_v13 = vmul.f32 %v122_v11, %v117_v9 }
  0xf1   :  { %v242_v14 = vpop.f32.mrf.mxu0 }
  0xf2   :  { %v124_v15 = vmul.f32 0.044715, %v123_v13 }
  0xf4   :  { %v125_v16 = vadd.f32 %v124_v15, %v117_v9 }
  0xf6   :  { %v126_v17 = vmul.f32 0.7978846, %v125_v16 }
  0xf8   :  { %258 = vtanh.f32 %v126_v17 }
 0x105   :  { %v259_v18 = vpop.eup %258 }
 0x106   :  { %v128_v19 = vadd.f32 1.0, %v259_v18 }
 0x108   :  { %v129_v20 = vmul.f32 0.5, %v128_v19 }
 0x10a   :  { %v130_v21 = vmul.f32 %v129_v20, %v117_v9 }
 0x10c   :  { %v131_v22 = vpack.c.bf16 %v130_v21, %v130_v21 }
 0x10e   :  { %233 = vmatmul.mubr.msk.bf16.vlgmr.msra.gmra.mxu1 %vm78_vm1, %v131_v22 }
 0x1ce   :  { %v193_v30 = vpop.f32.mrf.mxu1 }
 0x1cf   :  { %v194_v32 = vadd.f32 %v193_v30, %v139_v28 }
 0x1d0   :  { %v195_v31 = vpop.f32.mrf.mxu1 }
 0x1d1   :  { %v196_v33 = vadd.f32 %v195_v31, %v143_v29 }
 0x1d2   :  { %v197_v34 = vpop.f32.mrf.mxu1 }
 0x1d3   :  { %v202_v35 = vcombine.low %v194_v32, %v196_v33 }
 0x1d4   :  { %v198_v36 = vpop.f32.mrf.mxu1 }
 0x1d5   :  { %234 = vst.sshfl [vmem:[#allocation8] sm:$0x33 pattern:$0x76325410] %v202_v35 }
 0x1d6   :  { %331 = shalt.err (!%p328_p5)
}
 0x1d7   :  { %221 = dma.vmem_to_hbm [thread:$0]  %s219_s13, 64, %s412_s5, [#allocation4]  }
 0x1d8   :  { %344 = dma.done.wait [#allocation4], 64  }
 0x1d9   :  { %345 = vsyncadd [#allocation4], 4294967232 }
 0x1da   :  { %225 = vsyncpa [#allocation3], 1 }
 0x1db   :  { %226 = vsyncpa [#allocation6], 1 }
 0x1dc   :  { %227 = vsyncpa [#allocation4], 1 }

</bundles_post_ra>
